<compile_context>
chip_gen: v6e
topology: v6e:2x2x1
jax: 0.10.0
libtpu: 0.0.40
codegen_flags: <defaults>
</compile_context>

<pallas_src>
import math

import jax
import jax.numpy as jnp
from jax.experimental import pallas as pl
from jax.experimental.pallas import tpu as pltpu


def _tanh_affine_kernel(s_ref, b_ref, x_ref, y_ref):
    # s_ref, b_ref: (1, tw) float32 parameter rows (tiny, broadcast over rows).
    # x_ref, y_ref: (tm, tw) streaming tiles in the input's native dtype.
    xf = x_ref[...].astype(jnp.float32)           # upcast in vregs
    y = s_ref[...] * jnp.tanh(xf) + b_ref[...]    # VPU mul/add + EUP tanh
    y_ref[...] = y.astype(y_ref.dtype)
    # TODO(synk): on v6e/v7x bf16 compute would be slightly cheaper, but the
    # kernel is HBM-bound so f32 compute with native-dtype I/O is kept for
    # numerical safety across all generations (incl. v5e's f32-only VPU/EUP).


def tanh_forward(x: jax.Array, s: jax.Array, o: jax.Array,
                 *, max_rows_per_tile: int = 4096,
                 tile_bytes: int = 4 * 1024 * 1024) -> jax.Array:
    """Pallas equivalent of Tanh.forward: y = s * tanh(x) + o.

    Args:
        x: input of any shape (..., d).
        s: (d,) scale parameter.
        o: (d,) offset parameter.

    Returns:
        y with the same shape and dtype as x.
    """
    orig_shape = x.shape
    d = orig_shape[-1]
    assert s.shape == (d,) and o.shape == (d,)

    if not jnp.issubdtype(x.dtype, jnp.floating):
        x = x.astype(jnp.float32)
    out_dtype = x.dtype
    itemsize = jnp.dtype(out_dtype).itemsize

    x2 = x.reshape(-1, d)
    n = x2.shape[0]

    # --- lane-dense folding (+ row padding when needed) -------------------
    # Fold k consecutive rows into the lane axis so the last dim the kernel
    # stores is a multiple of 128 (full-vreg, unmasked vst).  Exact because
    # the flattened array is row-major and s/o are tiled k times to match.
    k = 1
    pad_rows = 0
    if d % 128 != 0:
        cand = 128 // math.gcd(d, 128)
        pad_n = -(-n // cand) * cand
        extra = pad_n - n
        # Pad a handful of rows rather than give up lane density, unless
        # padding would more than double the streamed bytes of a sizable input.
        if extra == 0 or extra * d <= max(n * d, 1 << 16):
            k = cand
            pad_rows = extra

    if pad_rows:
        x2 = jnp.pad(x2, ((0, pad_rows), (0, 0)))
    n_pad = n + pad_rows
    n_rows = n_pad // k
    width = d * k
    x2 = x2.reshape(n_rows, width)

    s_row = jnp.tile(s.astype(jnp.float32), k).reshape(1, width)
    b_row = jnp.tile(o.astype(jnp.float32), k).reshape(1, width)

    # --- tile selection (rows x width), ~4 MiB per x tile -----------------
    if 8 * width * itemsize <= tile_bytes:
        tw = width                                     # single width block
    else:
        tw = max(128, (tile_bytes // (8 * itemsize)) // 128 * 128)

    rows_fit = max(8, tile_bytes // (tw * itemsize))
    tm = min(n_rows, max_rows_per_tile, rows_fit)
    if tm >= n_rows and n_rows > 8:
        # Force >=2 row tiles so both v7x TensorCores get work (harmless on
        # single-TC v5e/v6e).
        tm = max(8, (((n_rows + 1) // 2) + 7) // 8 * 8)
    if tm < n_rows:
        tm = max(8, (tm // 8) * 8)                     # (8,128) sublane rule

    grid = (pl.cdiv(n_rows, tm), pl.cdiv(width, tw))

    y2 = pl.pallas_call(
        _tanh_affine_kernel,
        out_shape=jax.ShapeDtypeStruct((n_rows, width), out_dtype),
        grid_spec=pl.GridSpec(
            grid=grid,
            in_specs=[
                pl.BlockSpec((1, tw), lambda i, j: (0, j)),    # s
                pl.BlockSpec((1, tw), lambda i, j: (0, j)),    # o
                pl.BlockSpec((tm, tw), lambda i, j: (i, j)),   # x tile
            ],
            out_specs=pl.BlockSpec((tm, tw), lambda i, j: (i, j)),
        ),
        compiler_params=pltpu.CompilerParams(
            dimension_semantics=("parallel", "parallel"),
            vmem_limit_bytes=32 * 1024 * 1024,
        ),
    )(s_row, b_row, x2)

    y = y2.reshape(n_pad, d)
    if pad_rows:
        y = y[:n]
    return y.reshape(orig_shape)


if __name__ == "__main__":
    key = jax.random.PRNGKey(0)
    k_x1, k_x2, k_s, k_o = jax.random.split(key, 4)

    # --- case 1: 3-D f32 input, d=32 (lane folding: 16 rows -> (4, 128)) ---
    d1 = 32
    x1 = jax.random.normal(k_x1, (2, 8, d1), dtype=jnp.float32)
    s1 = 1.0 + 0.1 * jax.random.normal(k_s, (d1,), dtype=jnp.float32)
    o1 = 0.1 * jax.random.normal(k_o, (d1,), dtype=jnp.float32)

    y1 = jax.block_until_ready(tanh_forward(x1, s1, o1))
    y1_ref = s1 * jnp.tanh(x1) + o1
    assert y1.shape == x1.shape and y1.dtype == jnp.float32
    assert bool(jnp.allclose(y1, y1_ref, atol=1e-5, rtol=1e-5))

    # --- case 2: 2-D input, d=48, n=10 (row padding to 16, fold to (2, 384)) ---
    d2 = 48
    x2 = jax.random.normal(k_x2, (10, d2), dtype=jnp.float32)
    s2 = 1.0 + 0.1 * jax.random.normal(k_s, (d2,), dtype=jnp.float32)
    o2 = 0.1 * jax.random.normal(k_o, (d2,), dtype=jnp.float32)

    y2 = jax.block_until_ready(tanh_forward(x2, s2, o2))
    y2_ref = s2 * jnp.tanh(x2) + o2
    assert y2.shape == x2.shape and y2.dtype == jnp.float32
    assert bool(jnp.allclose(y2, y2_ref, atol=1e-5, rtol=1e-5))

    # --- case 3: bf16 input, native-dtype I/O, output dtype preserved ---
    x3 = jax.random.normal(k_x1, (2, 8, d1), dtype=jnp.float32).astype(jnp.bfloat16)
    y3 = jax.block_until_ready(tanh_forward(x3, s1, o1))
    y3_ref = (s1 * jnp.tanh(x3.astype(jnp.float32)) + o1).astype(jnp.bfloat16)
    assert y3.shape == x3.shape and y3.dtype == jnp.bfloat16
    assert bool(jnp.allclose(y3.astype(jnp.float32), y3_ref.astype(jnp.float32),
                             atol=2e-2, rtol=2e-2))

    print("KERNEL_OK")
</pallas_src>

<mosaic_0001>
module attributes {stable_mosaic.version = 11 : i64} {
  func.func @_tanh_affine_kernel(%arg0: i32, %arg1: i32, %arg2: memref<1x128xf32, #tpu.memory_space<vmem>>, %arg3: memref<1x128xf32, #tpu.memory_space<vmem>>, %arg4: memref<4x128xf32, #tpu.memory_space<vmem>>, %arg5: memref<4x128xf32, #tpu.memory_space<vmem>>) attributes {dimension_semantics = [#tpu.dimension_semantics<parallel>, #tpu.dimension_semantics<parallel>], iteration_bounds = array<i64: 1, 1>, scalar_prefetch = 0 : i64, scratch_operands = 0 : i64, tpu.core_type = #tpu.core_type<tc>, window_params = [{transform_indices = @transform_0, window_bounds = array<i64: 1, 128>}, {transform_indices = @transform_1, window_bounds = array<i64: 1, 128>}, {transform_indices = @transform_2, window_bounds = array<i64: 4, 128>}, {transform_indices = @transform_3, window_bounds = array<i64: 4, 128>}]} {
    %c0 = arith.constant 0 : index
    %c0_0 = arith.constant 0 : index
    %0 = vector.load %arg4[%c0, %c0_0] : memref<4x128xf32, #tpu.memory_space<vmem>>, vector<4x128xf32>
    %c0_1 = arith.constant 0 : index
    %c0_2 = arith.constant 0 : index
    %1 = vector.load %arg2[%c0_1, %c0_2] : memref<1x128xf32, #tpu.memory_space<vmem>>, vector<1x128xf32>
    %2 = math.tanh %0 : vector<4x128xf32>
    %3 = vector.broadcast %1 : vector<1x128xf32> to vector<4x128xf32>
    %4 = arith.mulf %3, %2 : vector<4x128xf32>
    %c0_3 = arith.constant 0 : index
    %c0_4 = arith.constant 0 : index
    %5 = vector.load %arg3[%c0_3, %c0_4] : memref<1x128xf32, #tpu.memory_space<vmem>>, vector<1x128xf32>
    %6 = vector.broadcast %5 : vector<1x128xf32> to vector<4x128xf32>
    %7 = arith.addf %4, %6 : vector<4x128xf32>
    %c0_5 = arith.constant 0 : index
    %c0_6 = arith.constant 0 : index
    %8 = vector.load %arg5[%c0_5, %c0_6] : memref<4x128xf32, #tpu.memory_space<vmem>>, vector<4x128xf32>
    tpu.vector_store %arg5[%c0_5, %c0_6], %7 {strides = array<i32>} : memref<4x128xf32, #tpu.memory_space<vmem>>, vector<4x128xf32>,
    return
  }
  func.func @transform_0(%arg0: i32, %arg1: i32) -> (i32, i32) {
    %c0_i32 = arith.constant 0 : i32
    %c0_i32_0 = arith.constant 0 : i32
    return %c0_i32, %arg1 : i32, i32
  }
  func.func @transform_1(%arg0: i32, %arg1: i32) -> (i32, i32) {
    %c0_i32 = arith.constant 0 : i32
    %c0_i32_0 = arith.constant 0 : i32
    return %c0_i32, %arg1 : i32, i32
  }
  func.func @transform_2(%arg0: i32, %arg1: i32) -> (i32, i32) {
    %c0_i32 = arith.constant 0 : i32
    return %arg0, %arg1 : i32, i32
  }
  func.func @transform_3(%arg0: i32, %arg1: i32) -> (i32, i32) {
    %c0_i32 = arith.constant 0 : i32
    return %arg0, %arg1 : i32, i32
  }
}

</mosaic_0001>

<bundles_post_ra>
// kernel: tpu_custom_call.1
= control target key start
LH: loop header
LB: loop body
LE: loop exit
PB: predicated region body
PF: predicated region fallthrough
CT: control target
= control target key end

     0   :  { %8 = vsyncpa [#allocation3], 0  ;;  %s182_s0 = inlined_call_operand.hbm [shape: f32[1,128], index: 0, kind: input, shape index: {}]   ;;  %s183_s1 = inlined_call_operand.vmem [shape: f32[1,128], index: 1, kind: input, shape index: {}]   ;;  %s184_s2 = inlined_call_operand.hbm [shape: f32[4,128], index: 2, kind: input, shape index: {}]   ;;  %s185_s3 = inlined_call_operand.hbm [shape: f32[4,128], index: 3, kind: output, shape index: {}]  }
   0x1   :  { %9 = vsyncpa [#allocation6], 0 }
   0x2   :  { %10 = vsyncpa [#allocation4], 0  ;;  %s147_s12 = smov [#allocation2]   ;;  %s148_s14 = smov [#allocation5]  }
   0x3   :  { %s17_s13 = sshll.u32 %s147_s12, 4  ;;  %s29_s15 = sshll.u32 %s148_s14, 4  ;;  %s18_s13 = int_to_ptr.vmem [resolvable:$true] %s17_s13  ;;  %s30_s15 = int_to_ptr.vmem [resolvable:$true] %s29_s15 }
   0x4   :  { %s89_s16 = scalar_lea.vmem %s18_s13, 16  ;;  %s93_s17 = scalar_lea.vmem %s18_s13, 32 }
   0x5   :  { %p90_p0 = scmp.ne.s32.totalorder %s18_s13, %s89_s16  ;;  %p94_p1 = scmp.lt.s32.totalorder %s18_s13, %s18_s13 }
   0x6   :  { %p95_p2 = scmp.lt.s32.totalorder %s93_s17, %s89_s16 }
   0x8   :  { %p96_p3 = por %p95_p2, %p94_p1 }
   0xa   :  { %p97_p4 = pnand %p96_p3, %p90_p0 }
   0xc   :  { %100 = shalt.err (!%p97_p4)
}
   0xd   :  { %20 = dma.hbm_to_vmem [thread:$0]  %s182_s0, 16, %s18_s13, [#allocation3]  }
   0xe   :  { %s109_s20 = scalar_lea.vmem %s30_s15, 64  ;;  %p114_p6 = scmp.lt.s32.totalorder %s30_s15, %s30_s15 }
   0xf   :  { %p110_p5 = scmp.ne.s32.totalorder %s30_s15, %s109_s20  ;;  %p115_p7 = scmp.lt.s32.totalorder %s109_s20, %s109_s20 }
  0x11   :  { %p116_p8 = por %p115_p7, %p114_p6 }
  0x13   :  { %p117_p9 = pnand %p116_p8, %p110_p5 }
  0x15   :  { %120 = shalt.err (!%p117_p9)
}
  0x16   :  { %32 = dma.hbm_to_vmem [thread:$0]  %s184_s2, 64, %s30_s15, [#allocation6]  }
  0x17   :  { %141 = dma.done.wait [#allocation3], 16  }
  0x18   :  { %142 = vsyncadd [#allocation3], 4294967280 }
  0x19   :  { %143 = dma.done.wait [#allocation6], 64  }
  0x1a   :  { %144 = vsyncadd [#allocation6], 4294967232  ;;  %v39_v0 = vld [vmem:[#allocation5] sm:$0xf]  ;;  %v74_v1 = vld [vmem:[#allocation2] ss:$0 sm:$0xff] }
  0x1b   :  { %79 = vtanh.f32 %v39_v0  ;;  %v75_v3 = vld [vmem:[%s183_s1] ss:$0 sm:$0xff]  ;;  %s149_s24 = smov [#allocation7]  }
  0x1c   :  { %s64_s25 = sshll.u32 %s149_s24, 4  ;;  %s65_s25 = int_to_ptr.vmem [resolvable:$true] %s64_s25 }
  0x1d   :  { %s121_s26 = scalar_lea.vmem %s65_s25, 64  ;;  %p126_p11 = scmp.lt.s32.totalorder %s65_s25, %s65_s25 }
  0x1e   :  { %p122_p10 = scmp.ne.s32.totalorder %s65_s25, %s121_s26  ;;  %p127_p12 = scmp.lt.s32.totalorder %s121_s26, %s121_s26 }
  0x20   :  { %p128_p13 = por %p127_p12, %p126_p11 }
  0x22   :  { %p129_p0 = pnand %p128_p13, %p122_p10 }
  0x28   :  { %v80_v2 = vpop.eup %79 }
  0x29   :  { %v48_v4 = vmul.f32 %v80_v2, %v74_v1 }
  0x2b   :  { %v56_v5 = vadd.f32 %v75_v3, %v48_v4 }
  0x2d   :  { %57 = vst [vmem:[#allocation7] sm:$0xf] %v56_v5 }
  0x2e   :  { %132 = shalt.err (!%p129_p0)
}
  0x2f   :  { %67 = dma.vmem_to_hbm [thread:$0]  %s65_s25, 64, %s185_s3, [#allocation4]  }
  0x30   :  { %145 = dma.done.wait [#allocation4], 64  }
  0x31   :  { %146 = vsyncadd [#allocation4], 4294967232 }
  0x32   :  { %71 = vsyncpa [#allocation3], 1 }
  0x33   :  { %72 = vsyncpa [#allocation6], 1 }
  0x34   :  { %73 = vsyncpa [#allocation4], 1 }

</bundles_post_ra>
